<compile_context>
chip_gen: v7x
topology: tpu7x:2x2x1
jax: 0.10.0
libtpu: 0.0.40
codegen_flags: <defaults>
</compile_context>

<pallas_src>
import functools

import jax
import jax.numpy as jnp
from jax.experimental import pallas as pl
from jax.experimental.pallas import tpu as pltpu


# ------------------------ host-side node-layout helpers ----------------------
def _bit_reverse(r, nbits):
    out = 0
    for b in range(nbits):
        out |= ((r >> b) & 1) << (nbits - 1 - b)
    return out


def _node_perm(depth):
    """Heap nodes 1..2^depth-1, level-by-level, bit-reversed within each level."""
    perm = []
    for m in range(depth):
        for r in range(2 ** m):
            perm.append(2 ** m + _bit_reverse(r, m))
    return perm


# ------------------------------ fused kernel ---------------------------------
def _forest_fused_kernel(xb_ref, yb_ref, w1_ref, b1_ref, g1_ref, be1_ref,
                         w2_ref, b2_ref, g2_ref, be2_ref, nw_ref, nb_ref,
                         out_ref, *, depth, n_trees, use_prenet, use_tree):
    eps = 1e-5
    x = xb_ref[...]                                        # (B, 1)
    B = x.shape[0]
    inv_b = 1.0 / B

    if use_prenet:
        # Linear(1,16): outer-product broadcast (in_features == 1).
        h = x * w1_ref[...] + b1_ref[...]                  # (B, 16)
        h = jnp.where(h >= 0, h, 0.01 * h)                 # LeakyReLU(0.01)
        # BatchNorm1d(16), training-mode batch stats, one-pass (sum / sum-sq).
        s = jnp.sum(h, axis=0, keepdims=True)
        s2 = jnp.sum(h * h, axis=0, keepdims=True)
        m = s * inv_b
        v = jnp.maximum(s2 * inv_b - m * m, 0.0)
        h = (h - m) * jax.lax.rsqrt(v + eps) * g1_ref[...] + be1_ref[...]
        # Linear(16,1): lane-axis contraction (VPU mul + XLU reduce, no MXU).
        h2 = jnp.sum(h * w2_ref[...], axis=1, keepdims=True) + b2_ref[...]   # (B, 1)
        h2 = jnp.where(h2 >= 0, h2, 0.01 * h2)
        s_b = jnp.sum(h2, axis=0, keepdims=True)
        s2_b = jnp.sum(h2 * h2, axis=0, keepdims=True)
        m2 = s_b * inv_b
        v2 = jnp.maximum(s2_b * inv_b - m2 * m2, 0.0)
        x = (h2 - m2) * jax.lax.rsqrt(v2 + eps) * g2_ref[...] + be2_ref[...]

    if not use_tree:
        out_ref[...] = x
        return

    T = n_trees
    L = 2 ** depth                                         # n_leaf == n_nodes

    # All node sigmoids for all trees in one lane-packed block.
    # lane = node_position * T + tree, node_position order = _node_perm(depth).
    d = jax.nn.sigmoid(x * nw_ref[...] + nb_ref[...])      # (B, (L-1)*T)

    # Level-wise mu cascade: leaves come out in bit-reversed order (a permutation
    # of the heap order, which is irrelevant for the permutation-invariant head).
    mu = None
    for j in range(1, depth + 1):
        m_lvl = depth - j                                  # heap level used by this factor
        lo = (2 ** m_lvl - 1) * T
        hi = (2 ** (m_lvl + 1) - 1) * T
        g = d[:, lo:hi]                                    # (B, 2^m_lvl * T)
        base = jnp.concatenate([g, 1.0 - g], axis=1)       # (B, 2^(m_lvl+1) * T)
        reps = 2 ** (j - 1)
        factor = base if reps == 1 else jnp.concatenate([base] * reps, axis=1)
        mu = factor if mu is None else mu * factor         # (B, L*T)

    # Training-mode head, fully batched over (leaf, tree) lanes:
    #   N      = mu_leaves.sum(0)
    #   y_hat  = (yb @ mu_leaves) / N
    #   pred_t = mu_leaves @ y_hat_leaves ; output = mean_t pred_t
    y = yb_ref[...]                                        # (B, 1)
    n_leaf = jnp.sum(mu, axis=0, keepdims=True)            # (1, L*T)
    ynum = jnp.sum(y * mu, axis=0, keepdims=True)          # (1, L*T)
    y_hat = ynum * pl.reciprocal(n_leaf, approx=False)     # exact (keeps 2e-3 tol)
    pred = jnp.sum(mu * y_hat, axis=1, keepdims=True) * (1.0 / T)
    out_ref[...] = pred                                    # (B, 1)


# --------------------------------- wrapper -----------------------------------
def forest_forward(xb, yb, params, *, tree_depth, n_trees,
                   use_prenet=True, use_tree=True):
    B, F = xb.shape
    n_nodes = 2 ** tree_depth
    # Host-side (one-time, tiny) lane packing of the per-tree node parameters:
    # drop unused node 0, reorder levels contiguously / bit-reversed-within-level,
    # lane = node_position * n_trees + tree.
    perm = jnp.array(_node_perm(tree_depth), dtype=jnp.int32)
    nw = params["node_w"][:, perm].T.reshape(1, (n_nodes - 1) * n_trees)
    nb = params["node_b"][:, perm].T.reshape(1, (n_nodes - 1) * n_trees)

    kern = functools.partial(_forest_fused_kernel, depth=tree_depth,
                             n_trees=n_trees, use_prenet=use_prenet,
                             use_tree=use_tree)
    out = pl.pallas_call(
        kern,
        out_shape=jax.ShapeDtypeStruct((B, 1 if use_tree else F), jnp.float32),
    )(xb, yb, params["w1"], params["b1"], params["g1"], params["be1"],
      params["w2"], params["b2"], params["g2"], params["be2"], nw, nb)
    if not use_tree:
        return out
    return out[:, 0]                                       # torch returns shape (B,)


# ---------------------------- pure-JAX reference -----------------------------
def _reference(xb, yb, p, *, tree_depth, n_trees):
    eps = 1e-5
    h = xb * p["w1"] + p["b1"]
    h = jnp.where(h >= 0, h, 0.01 * h)
    m = h.mean(0, keepdims=True); v = ((h - m) ** 2).mean(0, keepdims=True)
    h = (h - m) / jnp.sqrt(v + eps) * p["g1"] + p["be1"]
    h2 = (h * p["w2"]).sum(1, keepdims=True) + p["b2"]
    h2 = jnp.where(h2 >= 0, h2, 0.01 * h2)
    m2 = h2.mean(0, keepdims=True); v2 = ((h2 - m2) ** 2).mean(0, keepdims=True)
    x = (h2 - m2) / jnp.sqrt(v2 + eps) * p["g2"] + p["be2"]

    B = xb.shape[0]
    n_nodes = 2 ** tree_depth
    M = 2 * n_nodes
    preds = []
    for t in range(n_trees):
        d = jax.nn.sigmoid(x * p["node_w"][t][None, :] + p["node_b"][t][None, :])
        mu = [jnp.ones((B,)), jnp.ones((B,))]
        for k in range(2, M):
            pr = k // 2
            mu.append(mu[pr] * (d[:, pr] if k % 2 == 0 else 1.0 - d[:, pr]))
        mu = jnp.stack(mu, axis=1)                         # (B, M)
        N = mu.sum(0)
        y_hat = (yb[:, 0] @ mu) / N
        preds.append(mu[:, M // 2:] @ y_hat[M // 2:])
    return jnp.mean(jnp.stack(preds, 0), axis=0)


# ----------------------------------- main ------------------------------------
if __name__ == "__main__":
    B, F = 8, 1            # features4tree must be 1 for the original broadcast to hold
    tree_depth, n_trees = 3, 4
    n_nodes = 2 ** tree_depth

    key = jax.random.PRNGKey(0)
    ks = jax.random.split(key, 12)
    params = {
        # prenet: Linear(1,16) stored as weight.T (1,16); Linear(16,1) weight (1,16)
        "w1": 0.5 * jax.random.normal(ks[0], (1, 16), jnp.float32),
        "b1": 0.1 * jax.random.normal(ks[1], (1, 16), jnp.float32),
        "g1": 1.0 + 0.1 * jax.random.normal(ks[2], (1, 16), jnp.float32),
        "be1": 0.1 * jax.random.normal(ks[3], (1, 16), jnp.float32),
        "w2": 0.5 * jax.random.normal(ks[4], (1, 16), jnp.float32),
        "b2": 0.1 * jax.random.normal(ks[5], (1, F), jnp.float32),
        "g2": 1.0 + 0.1 * jax.random.normal(ks[6], (1, F), jnp.float32),
        "be2": 0.1 * jax.random.normal(ks[7], (1, F), jnp.float32),
        # per-tree node Linear(1,1) weights / biases
        "node_w": jax.random.normal(ks[8], (n_trees, n_nodes), jnp.float32),
        "node_b": 0.1 * jax.random.normal(ks[9], (n_trees, n_nodes), jnp.float32),
    }
    xb = jax.random.normal(ks[10], (B, F), jnp.float32)
    yb = jax.random.normal(ks[11], (B, 1), jnp.float32)

    pred = forest_forward(xb, yb, params, tree_depth=tree_depth, n_trees=n_trees)
    pred = jax.block_until_ready(pred)

    ref = _reference(xb, yb, params, tree_depth=tree_depth, n_trees=n_trees)
    assert pred.shape == (B,)
    assert bool(jnp.all(jnp.isfinite(pred)))
    assert bool(jnp.allclose(pred, ref, rtol=2e-3, atol=2e-3)), (pred, ref)
    print("KERNEL_OK")
</pallas_src>

<mosaic_0001>
module attributes {stable_mosaic.version = 11 : i64} {
  func.func @_forest_fused_kernel(%arg0: memref<8x1xf32, #tpu.memory_space<vmem>>, %arg1: memref<8x1xf32, #tpu.memory_space<vmem>>, %arg2: memref<1x16xf32, #tpu.memory_space<vmem>>, %arg3: memref<1x16xf32, #tpu.memory_space<vmem>>, %arg4: memref<1x16xf32, #tpu.memory_space<vmem>>, %arg5: memref<1x16xf32, #tpu.memory_space<vmem>>, %arg6: memref<1x16xf32, #tpu.memory_space<vmem>>, %arg7: memref<1x1xf32, #tpu.memory_space<vmem>>, %arg8: memref<1x1xf32, #tpu.memory_space<vmem>>, %arg9: memref<1x1xf32, #tpu.memory_space<vmem>>, %arg10: memref<1x28xf32, #tpu.memory_space<vmem>>, %arg11: memref<1x28xf32, #tpu.memory_space<vmem>>, %arg12: memref<8x1xf32, #tpu.memory_space<vmem>>) attributes {dimension_semantics = [], scalar_prefetch = 0 : i64, scratch_operands = 0 : i64, tpu.core_type = #tpu.core_type<tc>} {
    %c0 = arith.constant 0 : index
    %c0_0 = arith.constant 0 : index
    %0 = vector.load %arg0[%c0, %c0_0] : memref<8x1xf32, #tpu.memory_space<vmem>>, vector<8x1xf32>
    %c0_1 = arith.constant 0 : index
    %c0_2 = arith.constant 0 : index
    %1 = vector.load %arg2[%c0_1, %c0_2] : memref<1x16xf32, #tpu.memory_space<vmem>>, vector<1x16xf32>
    %2 = vector.broadcast %0 : vector<8x1xf32> to vector<8x16xf32>
    %3 = vector.broadcast %1 : vector<1x16xf32> to vector<8x16xf32>
    %4 = arith.mulf %2, %3 : vector<8x16xf32>
    %c0_3 = arith.constant 0 : index
    %c0_4 = arith.constant 0 : index
    %5 = vector.load %arg3[%c0_3, %c0_4] : memref<1x16xf32, #tpu.memory_space<vmem>>, vector<1x16xf32>
    %6 = vector.broadcast %5 : vector<1x16xf32> to vector<8x16xf32>
    %7 = arith.addf %4, %6 : vector<8x16xf32>
    %cst = arith.constant 0.000000e+00 : f32
    %8 = vector.broadcast %cst : f32 to vector<8x16xf32>
    %9 = arith.cmpf oge, %7, %8 : vector<8x16xf32>
    %cst_5 = arith.constant 0.00999999977 : f32
    %10 = vector.broadcast %cst_5 : f32 to vector<8x16xf32>
    %11 = arith.mulf %10, %7 : vector<8x16xf32>
    %12 = arith.select %9, %7, %11 : vector<8x16xi1>, vector<8x16xf32>
    %cst_6 = arith.constant dense<0.000000e+00> : vector<16xf32>
    %13 = vector.multi_reduction <add>, %12, %cst_6 [0] : vector<8x16xf32> to vector<16xf32>
    %14 = vector.shape_cast %13 : vector<16xf32> to vector<1x16xf32>
    %15 = arith.mulf %12, %12 : vector<8x16xf32>
    %cst_7 = arith.constant dense<0.000000e+00> : vector<16xf32>
    %16 = vector.multi_reduction <add>, %15, %cst_7 [0] : vector<8x16xf32> to vector<16xf32>
    %17 = vector.shape_cast %16 : vector<16xf32> to vector<1x16xf32>
    %cst_8 = arith.constant 1.250000e-01 : f32
    %18 = vector.broadcast %cst_8 : f32 to vector<1x16xf32>
    %19 = arith.mulf %14, %18 : vector<1x16xf32>
    %cst_9 = arith.constant 1.250000e-01 : f32
    %20 = vector.broadcast %cst_9 : f32 to vector<1x16xf32>
    %21 = arith.mulf %17, %20 : vector<1x16xf32>
    %22 = arith.mulf %19, %19 : vector<1x16xf32>
    %23 = arith.subf %21, %22 : vector<1x16xf32>
    %cst_10 = arith.constant 0.000000e+00 : f32
    %24 = vector.broadcast %cst_10 : f32 to vector<1x16xf32>
    %25 = arith.maximumf %23, %24 : vector<1x16xf32>
    %26 = vector.broadcast %19 : vector<1x16xf32> to vector<8x16xf32>
    %27 = arith.subf %12, %26 : vector<8x16xf32>
    %cst_11 = arith.constant 9.99999974E-6 : f32
    %28 = vector.broadcast %cst_11 : f32 to vector<1x16xf32>
    %29 = arith.addf %25, %28 : vector<1x16xf32>
    %30 = math.rsqrt %29 : vector<1x16xf32>
    %31 = vector.broadcast %30 : vector<1x16xf32> to vector<8x16xf32>
    %32 = arith.mulf %27, %31 : vector<8x16xf32>
    %c0_12 = arith.constant 0 : index
    %c0_13 = arith.constant 0 : index
    %33 = vector.load %arg4[%c0_12, %c0_13] : memref<1x16xf32, #tpu.memory_space<vmem>>, vector<1x16xf32>
    %34 = vector.broadcast %33 : vector<1x16xf32> to vector<8x16xf32>
    %35 = arith.mulf %32, %34 : vector<8x16xf32>
    %c0_14 = arith.constant 0 : index
    %c0_15 = arith.constant 0 : index
    %36 = vector.load %arg5[%c0_14, %c0_15] : memref<1x16xf32, #tpu.memory_space<vmem>>, vector<1x16xf32>
    %37 = vector.broadcast %36 : vector<1x16xf32> to vector<8x16xf32>
    %38 = arith.addf %35, %37 : vector<8x16xf32>
    %c0_16 = arith.constant 0 : index
    %c0_17 = arith.constant 0 : index
    %39 = vector.load %arg6[%c0_16, %c0_17] : memref<1x16xf32, #tpu.memory_space<vmem>>, vector<1x16xf32>
    %40 = vector.broadcast %39 : vector<1x16xf32> to vector<8x16xf32>
    %41 = arith.mulf %38, %40 : vector<8x16xf32>
    %cst_18 = arith.constant dense<0.000000e+00> : vector<8xf32>
    %42 = vector.multi_reduction <add>, %41, %cst_18 [1] : vector<8x16xf32> to vector<8xf32>
    %43 = vector.shape_cast %42 : vector<8xf32> to vector<8x1xf32>
    %c0_19 = arith.constant 0 : index
    %c0_20 = arith.constant 0 : index
    %44 = vector.load %arg7[%c0_19, %c0_20] : memref<1x1xf32, #tpu.memory_space<vmem>>, vector<1x1xf32>
    %45 = vector.broadcast %44 : vector<1x1xf32> to vector<8x1xf32>
    %46 = arith.addf %43, %45 : vector<8x1xf32>
    %cst_21 = arith.constant 0.000000e+00 : f32
    %47 = vector.broadcast %cst_21 : f32 to vector<8x1xf32>
    %48 = arith.cmpf oge, %46, %47 : vector<8x1xf32>
    %cst_22 = arith.constant 0.00999999977 : f32
    %49 = vector.broadcast %cst_22 : f32 to vector<8x1xf32>
    %50 = arith.mulf %49, %46 : vector<8x1xf32>
    %51 = arith.select %48, %46, %50 : vector<8x1xi1>, vector<8x1xf32>
    %cst_23 = arith.constant dense<0.000000e+00> : vector<1xf32>
    %52 = vector.multi_reduction <add>, %51, %cst_23 [0] : vector<8x1xf32> to vector<1xf32>
    %53 = vector.shape_cast %52 : vector<1xf32> to vector<1x1xf32>
    %54 = arith.mulf %51, %51 : vector<8x1xf32>
    %cst_24 = arith.constant dense<0.000000e+00> : vector<1xf32>
    %55 = vector.multi_reduction <add>, %54, %cst_24 [0] : vector<8x1xf32> to vector<1xf32>
    %56 = vector.shape_cast %55 : vector<1xf32> to vector<1x1xf32>
    %cst_25 = arith.constant 1.250000e-01 : f32
    %57 = vector.broadcast %cst_25 : f32 to vector<1x1xf32>
    %58 = arith.mulf %53, %57 : vector<1x1xf32>
    %cst_26 = arith.constant 1.250000e-01 : f32
    %59 = vector.broadcast %cst_26 : f32 to vector<1x1xf32>
    %60 = arith.mulf %56, %59 : vector<1x1xf32>
    %61 = arith.mulf %58, %58 : vector<1x1xf32>
    %62 = arith.subf %60, %61 : vector<1x1xf32>
    %cst_27 = arith.constant 0.000000e+00 : f32
    %63 = vector.broadcast %cst_27 : f32 to vector<1x1xf32>
    %64 = arith.maximumf %62, %63 : vector<1x1xf32>
    %65 = vector.broadcast %58 : vector<1x1xf32> to vector<8x1xf32>
    %66 = arith.subf %51, %65 : vector<8x1xf32>
    %cst_28 = arith.constant 9.99999974E-6 : f32
    %67 = vector.broadcast %cst_28 : f32 to vector<1x1xf32>
    %68 = arith.addf %64, %67 : vector<1x1xf32>
    %69 = math.rsqrt %68 : vector<1x1xf32>
    %70 = vector.broadcast %69 : vector<1x1xf32> to vector<8x1xf32>
    %71 = arith.mulf %66, %70 : vector<8x1xf32>
    %c0_29 = arith.constant 0 : index
    %c0_30 = arith.constant 0 : index
    %72 = vector.load %arg8[%c0_29, %c0_30] : memref<1x1xf32, #tpu.memory_space<vmem>>, vector<1x1xf32>
    %73 = vector.broadcast %72 : vector<1x1xf32> to vector<8x1xf32>
    %74 = arith.mulf %71, %73 : vector<8x1xf32>
    %c0_31 = arith.constant 0 : index
    %c0_32 = arith.constant 0 : index
    %75 = vector.load %arg9[%c0_31, %c0_32] : memref<1x1xf32, #tpu.memory_space<vmem>>, vector<1x1xf32>
    %76 = vector.broadcast %75 : vector<1x1xf32> to vector<8x1xf32>
    %77 = arith.addf %74, %76 : vector<8x1xf32>
    %c0_33 = arith.constant 0 : index
    %c0_34 = arith.constant 0 : index
    %78 = vector.load %arg10[%c0_33, %c0_34] : memref<1x28xf32, #tpu.memory_space<vmem>>, vector<1x28xf32>
    %79 = vector.broadcast %77 : vector<8x1xf32> to vector<8x28xf32>
    %80 = vector.broadcast %78 : vector<1x28xf32> to vector<8x28xf32>
    %81 = arith.mulf %79, %80 : vector<8x28xf32>
    %c0_35 = arith.constant 0 : index
    %c0_36 = arith.constant 0 : index
    %82 = vector.load %arg11[%c0_35, %c0_36] : memref<1x28xf32, #tpu.memory_space<vmem>>, vector<1x28xf32>
    %83 = vector.broadcast %82 : vector<1x28xf32> to vector<8x28xf32>
    %84 = arith.addf %81, %83 : vector<8x28xf32>
    %85 = arith.negf %84 : vector<8x28xf32>
    %86 = math.exp %85 : vector<8x28xf32>
    %cst_37 = arith.constant 1.000000e+00 : f32
    %87 = vector.broadcast %cst_37 : f32 to vector<8x28xf32>
    %88 = arith.addf %87, %86 : vector<8x28xf32>
    %89 = arith.divf %87, %88 : vector<8x28xf32>
    %90 = vector.extract_strided_slice %89 {offsets = [0, 12], sizes = [8, 16], strides = [1, 1]} : vector<8x28xf32> to vector<8x16xf32>
    %cst_38 = arith.constant 1.000000e+00 : f32
    %91 = vector.broadcast %cst_38 : f32 to vector<8x16xf32>
    %92 = arith.subf %91, %90 : vector<8x16xf32>
    %93 = tpu.concatenate %90, %92 in 1 : vector<8x16xf32>, vector<8x16xf32> -> vector<8x32xf32>
    %94 = vector.extract_strided_slice %89 {offsets = [0, 4], sizes = [8, 8], strides = [1, 1]} : vector<8x28xf32> to vector<8x8xf32>
    %cst_39 = arith.constant 1.000000e+00 : f32
    %95 = vector.broadcast %cst_39 : f32 to vector<8x8xf32>
    %96 = arith.subf %95, %94 : vector<8x8xf32>
    %97 = tpu.concatenate %94, %96 in 1 : vector<8x8xf32>, vector<8x8xf32> -> vector<8x16xf32>
    %98 = tpu.concatenate %97, %97 in 1 : vector<8x16xf32>, vector<8x16xf32> -> vector<8x32xf32>
    %99 = arith.mulf %93, %98 : vector<8x32xf32>
    %100 = vector.extract_strided_slice %89 {offsets = [0, 0], sizes = [8, 4], strides = [1, 1]} : vector<8x28xf32> to vector<8x4xf32>
    %cst_40 = arith.constant 1.000000e+00 : f32
    %101 = vector.broadcast %cst_40 : f32 to vector<8x4xf32>
    %102 = arith.subf %101, %100 : vector<8x4xf32>
    %103 = tpu.concatenate %100, %102 in 1 : vector<8x4xf32>, vector<8x4xf32> -> vector<8x8xf32>
    %104 = tpu.concatenate %103, %103, %103, %103 in 1 : vector<8x8xf32>, vector<8x8xf32>, vector<8x8xf32>, vector<8x8xf32> -> vector<8x32xf32>
    %105 = arith.mulf %99, %104 : vector<8x32xf32>
    %c0_41 = arith.constant 0 : index
    %c0_42 = arith.constant 0 : index
    %106 = vector.load %arg1[%c0_41, %c0_42] : memref<8x1xf32, #tpu.memory_space<vmem>>, vector<8x1xf32>
    %cst_43 = arith.constant dense<0.000000e+00> : vector<32xf32>
    %107 = vector.multi_reduction <add>, %105, %cst_43 [0] : vector<8x32xf32> to vector<32xf32>
    %108 = vector.shape_cast %107 : vector<32xf32> to vector<1x32xf32>
    %109 = vector.broadcast %106 : vector<8x1xf32> to vector<8x32xf32>
    %110 = arith.mulf %109, %105 : vector<8x32xf32>
    %cst_44 = arith.constant dense<0.000000e+00> : vector<32xf32>
    %111 = vector.multi_reduction <add>, %110, %cst_44 [0] : vector<8x32xf32> to vector<32xf32>
    %112 = vector.shape_cast %111 : vector<32xf32> to vector<1x32xf32>
    %113 = tpu.reciprocal %108 : vector<1x32xf32> -> vector<1x32xf32>
    %114 = arith.mulf %112, %113 : vector<1x32xf32>
    %115 = vector.broadcast %114 : vector<1x32xf32> to vector<8x32xf32>
    %116 = arith.mulf %105, %115 : vector<8x32xf32>
    %cst_45 = arith.constant dense<0.000000e+00> : vector<8xf32>
    %117 = vector.multi_reduction <add>, %116, %cst_45 [1] : vector<8x32xf32> to vector<8xf32>
    %118 = vector.shape_cast %117 : vector<8xf32> to vector<8x1xf32>
    %cst_46 = arith.constant 2.500000e-01 : f32
    %119 = vector.broadcast %cst_46 : f32 to vector<8x1xf32>
    %120 = arith.mulf %118, %119 : vector<8x1xf32>
    %c0_47 = arith.constant 0 : index
    %c0_48 = arith.constant 0 : index
    %121 = vector.load %arg12[%c0_47, %c0_48] : memref<8x1xf32, #tpu.memory_space<vmem>>, vector<8x1xf32>
    tpu.vector_store %arg12[%c0_47, %c0_48], %120 {strides = array<i32>} : memref<8x1xf32, #tpu.memory_space<vmem>>, vector<8x1xf32>,
    return
  }
}

</mosaic_0001>

<bundles_post_ra>
// kernel: tpu_custom_call.1
= control target key start
LH: loop header
LB: loop body
LE: loop exit
PB: predicated region body
PF: predicated region fallthrough
CT: control target
= control target key end

     0   :  { %v305_v0 = vmov 0   ;;  %vm72_vm0 = vcmask 130048   ;;  %vm135_vm2 = vcmask 7168   ;;  %s306_s16 = smov 4   ;;  %s307_s17 = smov 124   ;;  %vm216_vm4 = vcmask 64512   ;;  %s430_s0 = inlined_call_operand.vmem [shape: f32[8,1], index: 0, kind: input, shape index: {}]   ;;  %s431_s7 = inlined_call_operand.<no memory space> [shape: f32[1,1], index: 7, kind: input, shape index: {}]   ;;  %s432_s2 = inlined_call_operand.vmem [shape: f32[1,16], index: 2, kind: input, shape index: {}]   ;;  %s433_s3 = inlined_call_operand.vmem [shape: f32[1,16], index: 3, kind: input, shape index: {}]   ;;  %s434_s4 = inlined_call_operand.vmem [shape: f32[1,16], index: 4, kind: input, shape index: {}]   ;;  %s435_s5 = inlined_call_operand.vmem [shape: f32[1,16], index: 5, kind: input, shape index: {}]   ;;  %s436_s6 = inlined_call_operand.vmem [shape: f32[1,16], index: 6, kind: input, shape index: {}]   ;;  %s437_s8 = inlined_call_operand.<no memory space> [shape: f32[1,1], index: 8, kind: input, shape index: {}]   ;;  %s438_s9 = inlined_call_operand.<no memory space> [shape: f32[1,1], index: 9, kind: input, shape index: {}]   ;;  %s439_s10 = inlined_call_operand.vmem [shape: f32[1,28], index: 10, kind: input, shape index: {}]   ;;  %s440_s11 = inlined_call_operand.vmem [shape: f32[1,28], index: 11, kind: input, shape index: {}]   ;;  %s441_s1 = inlined_call_operand.vmem [shape: f32[8,1], index: 1, kind: input, shape index: {}]   ;;  %s442_s12 = inlined_call_operand.vmem [shape: f32[8,1], index: 12, kind: output, shape index: {}]  }
   0x1   :  { %293 = vset.pattern.permute.xlu0 %v305_v0  ;;  %v47_v1 = vld [vmem:[%s430_s0] sm:$0xff]  ;;  %294 = vset.pattern.permute.xlu1 %v305_v0  ;;  %v17_v2 = vstv %s431_s7  ;;  %v19_v41 = vstv %s437_s8  ;;  %v21_v42 = vstv %s438_s9  ;;  %s308_s18 = smov 116   ;;  %vm224_vm5 = vcmask 31744   ;;  %s311_s19 = smov 24  }
   0x2   :  { %51 = vperm.xlu0 %293, %v47_v1   ;;  %18 = vst [vmem:[#allocation2] sm:$0x1] %v17_v2  ;;  %v275_v3 = vld [vmem:[%s432_s2] ss:$0 sm:$0xff]  ;;  %20 = vst [vmem:[#allocation3] sm:$0x1] %v19_v41 }
   0x3   :  { %v276_v4 = vld [vmem:[%s433_s3] ss:$0 sm:$0xff]  ;;  %22 = vst [vmem:[#allocation4] sm:$0x1] %v21_v42  ;;  %vm238_vm6 = vcmask 195584   ;;  %vm242_vm7 = vcmask 261120  }
   0x4   :  { %v277_v33 = vld [vmem:[%s434_s4] ss:$0 sm:$0xff] }
   0x5   :  { %v278_v35 = vld [vmem:[%s435_s5] ss:$0 sm:$0xff] }
   0x6   :  { %v279_v37 = vld [vmem:[%s436_s6] ss:$0 sm:$0xff] }
   0x9   :  { %v280_v43 = vld [vmem:[#allocation2] ss:$0 sm:$0xff] }
  0x81   :  { %v52_v5 = vpop.permute.xlu0 %51 }
  0x82   :  { %v60_v6 = vmul.f32 %v275_v3, %v52_v5 }
  0x84   :  { %v68_v7 = vadd.f32 %v276_v4, %v60_v6 }
  0x86   :  { %vm69_vm1 = vcmp.ge.f32.partialorder %v68_v7, 0.0  ;;  %v70_v8 = vmul.f32 0.01, %v68_v7 }
  0x88   :  { %v71_v9 = vsel %vm69_vm1, %v68_v7, %v70_v8  ;;  %v281_v7 = vld [vmem:[#allocation3] ss:$0 sm:$0xff] }
  0x89   :  { %v73_v10 = vsel %vm72_vm0, %v71_v9, 0.0  ;;  %v80_v11 = vmul.f32 %v71_v9, %v71_v9 }
  0x8a   :  { %v74_v12 = vrot.slane %v73_v10, 4 }
  0x8b   :  { %v81_v13 = vsel %vm72_vm0, %v80_v11, 0.0 }
  0x8c   :  { %v75_v14 = vadd.f32 %v74_v12, %v73_v10  ;;  %v82_v15 = vrot.slane %v81_v13, 4  ;;  %v283_v12 = vld [vmem:[%s439_s10] ss:$0 sm:$0xff]  ;;  %s309_s10 = smov 16  }
  0x8e   :  { %v76_v16 = vrot.slane %v75_v14, 2  ;;  %v83_v17 = vadd.f32 %v82_v15, %v81_v13  ;;  %v284_v13 = vld [vmem:[%s440_s11] ss:$0 sm:$0xff]  ;;  %s310_s11 = smov 8  }
  0x90   :  { %v77_v18 = vadd.f32 %v76_v16, %v75_v14  ;;  %v84_v19 = vrot.slane %v83_v17, 2 }
  0x92   :  { %v78_v20 = vrot.slane %v77_v18, 1  ;;  %v85_v21 = vadd.f32 %v84_v19, %v83_v17 }
  0x94   :  { %v79_v22 = vadd.f32 %v78_v20, %v77_v18  ;;  %v86_v23 = vrot.slane %v85_v21, 1 }
  0x96   :  { %v87_v24 = vadd.f32 %v86_v23, %v85_v21  ;;  %v88_v25 = vmul.f32 0.125, %v79_v22 }
  0x98   :  { %v89_v26 = vmul.f32 0.125, %v87_v24  ;;  %v90_v27 = vmul.f32 %v88_v25, %v88_v25  ;;  %v93_v31 = vsub.f32 %v71_v9, %v88_v25  ;;  %v282_v9 = vld [vmem:[#allocation4] ss:$0 sm:$0xff] }
  0x9a   :  { %v91_v28 = vsub.f32 %v89_v26, %v90_v27  ;;  %v241_v26 = vld [vmem:[%s441_s1] sm:$0xff] }
  0x9c   :  { %v92_v29 = vmax.f32 %v91_v28, 0.0 }
  0x9e   :  { %v94_v30 = vadd.f32 1e-05, %v92_v29 }
  0xa0   :  { %295 = vrsqrt.f32 %v94_v30 }
  0xaa   :  { %v296_v32 = vpop.eup %295 }
  0xab   :  { %v96_v34 = vmul.f32 %v296_v32, %v93_v31 }
  0xad   :  { %v104_v36 = vmul.f32 %v277_v33, %v96_v34 }
  0xaf   :  { %v112_v38 = vadd.f32 %v278_v35, %v104_v36 }
  0xb1   :  { %v120_v39 = vmul.f32 %v279_v37, %v112_v38 }
  0xb3   :  { %v121_v40 = vsel %vm72_vm0, %v120_v39, 0.0 }
  0xb4   :  { %122 = vadd.xlane.f32.xlu0 %v121_v40 }
 0x141   :  { %v123_v44 = vpop.xlane.xlu0 %122 }
 0x142   :  { %v131_v45 = vadd.f32 %v280_v43, %v123_v44 }
 0x144   :  { %vm132_vm3 = vcmp.ge.f32.partialorder %v131_v45, 0.0  ;;  %v133_v46 = vmul.f32 0.01, %v131_v45 }
 0x146   :  { %v134_v47 = vsel %vm132_vm3, %v131_v45, %v133_v46 }
 0x147   :  { %v136_v48 = vsel %vm135_vm2, %v134_v47, 0.0  ;;  %v143_v49 = vmul.f32 %v134_v47, %v134_v47 }
 0x148   :  { %v137_v50 = vrot.slane %v136_v48, 4 }
 0x149   :  { %v144_v51 = vsel %vm135_vm2, %v143_v49, 0.0 }
 0x14a   :  { %v138_v52 = vadd.f32 %v137_v50, %v136_v48  ;;  %v145_v53 = vrot.slane %v144_v51, 4 }
 0x14c   :  { %v139_v54 = vrot.slane %v138_v52, 2  ;;  %v146_v55 = vadd.f32 %v145_v53, %v144_v51 }
 0x14e   :  { %v140_v56 = vadd.f32 %v139_v54, %v138_v52  ;;  %v147_v57 = vrot.slane %v146_v55, 2 }
 0x150   :  { %v141_v58 = vrot.slane %v140_v56, 1  ;;  %v148_v59 = vadd.f32 %v147_v57, %v146_v55 }
 0x152   :  { %v142_v60 = vadd.f32 %v141_v58, %v140_v56  ;;  %v149_v61 = vrot.slane %v148_v59, 1 }
 0x154   :  { %v150_v62 = vadd.f32 %v149_v61, %v148_v59  ;;  %v151_v63 = vmul.f32 0.125, %v142_v60 }
 0x156   :  { %v152_v0 = vmul.f32 0.125, %v150_v62  ;;  %v153_v1 = vmul.f32 %v151_v63, %v151_v63  ;;  %v156_v5 = vsub.f32 %v134_v47, %v151_v63 }
 0x158   :  { %v154_v2 = vsub.f32 %v152_v0, %v153_v1 }
 0x15a   :  { %v155_v3 = vmax.f32 %v154_v2, 0.0 }
 0x15c   :  { %v157_v4 = vadd.f32 1e-05, %v155_v3 }
 0x15e   :  { %297 = vrsqrt.f32 %v157_v4 }
 0x168   :  { %v298_v6 = vpop.eup %297 }
 0x169   :  { %v159_v8 = vmul.f32 %v298_v6, %v156_v5 }
 0x16b   :  { %v167_v10 = vmul.f32 %v281_v7, %v159_v8 }
 0x16d   :  { %v175_v11 = vadd.f32 %v282_v9, %v167_v10 }
 0x16f   :  { %179 = vperm.xlu1 %294, %v175_v11  }
 0x1ee   :  { %v180_v14 = vpop.permute.xlu1 %179 }
 0x1ef   :  { %v188_v15 = vmul.f32 %v283_v12, %v180_v14 }
 0x1f1   :  { %v196_v16 = vadd.f32 %v284_v13, %v188_v15 }
 0x1f3   :  { %v285_v17 = vmul.f32 -1.442695, %v196_v16 }
 0x1f5   :  { %299 = vpow2.f32 %v285_v17 }
 0x1ff   :  { %v300_v18 = vpop.eup %299 }
 0x200   :  { %v200_v19 = vadd.f32 1.0, %v300_v18 }
 0x202   :  { %301 = vrcp.f32 %v200_v19 }
 0x20c   :  { %v302_v20 = vpop.eup %301 }
 0x20d   :  { %v203_v21 = vsub.f32 1.0, %v302_v20 }
 0x20f   :  { %209 = vrot.lane.b32.xlu1 %v203_v21, %s306_s16 }
 0x213   :  { %213 = vrot.lane.b32.xlu1 %v302_v20, %s307_s17 }
 0x217   :  { %205 = vrot.lane.b32.xlu1 %v302_v20, %s308_s18 }
 0x281   :  { %v210_v22 = vpop.permute.xlu1 %209 }
 0x282   :  { %v225_v25 = vsel %vm224_vm5, %v302_v20, %v210_v22 }
 0x285   :  { %v214_v23 = vpop.permute.xlu1 %213 }
 0x286   :  { %v217_v24 = vsel %vm216_vm4, %v214_v23, %v210_v22 }
 0x287   :  { %219 = vrot.lane.b32.xlu1 %v217_v24, %s309_s10 }
 0x289   :  { %v206_v27 = vpop.permute.xlu1 %205 }
 0x28a   :  { %v212_v32 = vsel %vm72_vm0, %v206_v27, %v210_v22 }
 0x28b   :  { %227 = vrot.lane.b32.xlu1 %v225_v25, %s310_s11 }
 0x28f   :  { %230 = vrot.lane.b32.xlu1 %v225_v25, %s309_s10 }
 0x293   :  { %233 = vrot.lane.b32.xlu1 %v225_v25, %s311_s19 }
 0x297   :  { %252 = vperm.xlu1 %294, %v241_v26  }
 0x2f9   :  { %v220_v28 = vpop.permute.xlu1 %219 }
 0x2fa   :  { %v222_v31 = vsel %vm72_vm0, %v217_v24, %v220_v28 }
 0x2fb   :  { %v223_v34 = vmul.f32 %v222_v31, %v212_v32 }
 0x2fd   :  { %v228_v29 = vpop.permute.xlu1 %227 }
 0x2fe   :  { %v236_v33 = vsel %vm216_vm4, %v225_v25, %v228_v29 }
 0x301   :  { %v231_v30 = vpop.permute.xlu1 %230 }
 0x302   :  { %v237_v35 = vsel %vm72_vm0, %v236_v33, %v231_v30 }
 0x305   :  { %v234_v36 = vpop.permute.xlu1 %233 }
 0x306   :  { %v239_v37 = vsel %vm238_vm6, %v237_v35, %v234_v36 }
 0x307   :  { %v240_v38 = vmul.f32 %v239_v37, %v223_v34 }
 0x309   :  { %v243_v39 = vsel %vm242_vm7, %v240_v38, 0.0 }
 0x30a   :  { %v244_v40 = vrot.slane %v243_v39, 4 }
 0x30c   :  { %v245_v41 = vadd.f32 %v244_v40, %v243_v39 }
 0x30e   :  { %v246_v42 = vrot.slane %v245_v41, 2 }
 0x310   :  { %v247_v43 = vadd.f32 %v246_v42, %v245_v41 }
 0x312   :  { %v248_v44 = vrot.slane %v247_v43, 1 }
 0x314   :  { %v249_v46 = vadd.f32 %v248_v44, %v247_v43 }
 0x316   :  { %v253_v45 = vpop.permute.xlu1 %252  ;;  %303 = vrcp.f32 %v249_v46 }
 0x317   :  { %v255_v47 = vmul.f32 %v253_v45, %v240_v38 }
 0x319   :  { %v256_v48 = vsel %vm242_vm7, %v255_v47, 0.0 }
 0x31a   :  { %v257_v49 = vrot.slane %v256_v48, 4 }
 0x31c   :  { %v258_v50 = vadd.f32 %v257_v49, %v256_v48 }
 0x31e   :  { %v259_v51 = vrot.slane %v258_v50, 2 }
 0x320   :  { %v260_v52 = vadd.f32 %v259_v51, %v258_v50  ;;  %v304_v55 = vpop.eup %303 }
 0x322   :  { %v261_v53 = vrot.slane %v260_v52, 1 }
 0x324   :  { %v262_v54 = vadd.f32 %v261_v53, %v260_v52 }
 0x326   :  { %v264_v56 = vmul.f32 %v304_v55, %v262_v54 }
 0x328   :  { %v265_v57 = vmul.f32 %v264_v56, %v240_v38 }
 0x32a   :  { %v266_v58 = vsel %vm242_vm7, %v265_v57, 0.0 }
 0x32b   :  { %267 = vadd.xlane.f32.xlu0 %v266_v58 }
 0x3b8   :  { %v268_v59 = vpop.xlane.xlu0 %267 }
 0x3b9   :  { %v269_v60 = vmul.f32 0.25, %v268_v59 }
 0x3bb   :  { %270 = vst.msk [vmem:[%s442_s12] sm:$0xff] %vm135_vm2, %v269_v60 }

</bundles_post_ra>
